<compile_context>
chip_gen: v7x
topology: tpu7x:2x2x1
jax: 0.10.0
libtpu: 0.0.40
codegen_flags: <defaults>
</compile_context>

<pallas_src>
import functools

import jax
import jax.numpy as jnp
from jax.experimental import pallas as pl
from jax.experimental.pallas import tpu as pltpu


def _gru_kernel(vT_ref, wT_ref, b_ref, hT_ref, out_ref, *, hidden_size):
    """Fused GRU cell, batch-major.

    vT_ref : (B, K)   concat([x; h; m])^T in the matmul dtype
    wT_ref : (K, 4H)  fused weight (transposed) in the matmul dtype
    b_ref  : (1, 4H)  pre-summed per-block biases, f32
    hT_ref : (B, H)   hidden^T in f32 (for the (1-z)*n + z*h blend)
    out_ref: (B, H)   new hidden^T, f32
    """
    H = hidden_size
    # One MXU push for all gates; f32 accumulation.
    pre = jnp.dot(vT_ref[...], wT_ref[...],
                  preferred_element_type=jnp.float32) + b_ref[...]
    r = jax.nn.sigmoid(pre[:, 0:H])
    z = jax.nn.sigmoid(pre[:, H:2 * H])
    n = jnp.tanh(pre[:, 2 * H:3 * H] + r * pre[:, 3 * H:4 * H])
    h = hT_ref[...]
    out_ref[...] = ((1.0 - z) * n + z * h).astype(out_ref.dtype)


def pack_params(params, matmul_dtype=jnp.float32):
    """One-time host-side packing of the 18 CustomGRU parameters.

    Returns {"wT": (K, 4H) matmul_dtype, "b": (1, 4H) f32} where
    K = input_size + hidden_size + memory_size.
    Use matmul_dtype=jnp.bfloat16 on v6e/v7x for half the weight DMA bytes.
    """
    W_ir, W_iz, W_in = params["W_ir"], params["W_iz"], params["W_in"]
    W_hr, W_hz, W_hn = params["W_hr"], params["W_hz"], params["W_hn"]
    W_mr, W_mz, W_mn = params["W_mr"], params["W_mz"], params["W_mn"]

    zeros_h = jnp.zeros_like(W_hn)   # (H, H)
    zeros_i = jnp.zeros_like(W_in)   # (H, I)
    zeros_m = jnp.zeros_like(W_mn)   # (H, M)

    W_r = jnp.concatenate([W_ir, W_hr, W_mr], axis=1)
    W_z = jnp.concatenate([W_iz, W_hz, W_mz], axis=1)
    W_n = jnp.concatenate([W_in, zeros_h, W_mn], axis=1)
    W_g = jnp.concatenate([zeros_i, W_hn, zeros_m], axis=1)
    W_fused = jnp.concatenate([W_r, W_z, W_n, W_g], axis=0)      # (4H, K)

    b_r = params["b_ir"] + params["b_hr"] + params["b_mr"]
    b_z = params["b_iz"] + params["b_hz"] + params["b_mz"]
    b_n = params["b_in"] + params["b_mn"]
    b_g = params["b_hn"]
    b_fused = jnp.concatenate([b_r, b_z, b_n, b_g], axis=0)      # (4H, 1)

    return {
        "wT": jnp.asarray(W_fused.T, dtype=matmul_dtype),        # (K, 4H)
        "b": jnp.asarray(b_fused.T, dtype=jnp.float32),          # (1, 4H)
    }


def custom_gru_forward(x, h, m, packed):
    """x:(I,B), h:(H,B), m:(M,B), packed from pack_params -> (H,B) f32."""
    wT, b = packed["wT"], packed["b"]
    hidden_size, batch = h.shape

    # Per-call layout plumbing (outside the kernel): batch-major operand.
    vT = jnp.concatenate([x, h, m], axis=0).T.astype(wT.dtype)   # (B, K)
    hT = h.T.astype(jnp.float32)                                 # (B, H)

    kernel = functools.partial(_gru_kernel, hidden_size=hidden_size)

    in_specs = [
        pl.BlockSpec(vT.shape, lambda: (0, 0), memory_space=pltpu.MemorySpace.VMEM),
        pl.BlockSpec(wT.shape, lambda: (0, 0), memory_space=pltpu.MemorySpace.VMEM),
        pl.BlockSpec(b.shape, lambda: (0, 0), memory_space=pltpu.MemorySpace.VMEM),
        pl.BlockSpec(hT.shape, lambda: (0, 0), memory_space=pltpu.MemorySpace.VMEM),
    ]
    out_spec = pl.BlockSpec(
        (batch, hidden_size), lambda: (0, 0), memory_space=pltpu.MemorySpace.VMEM
    )

    out_bT = pl.pallas_call(
        kernel,
        out_shape=jax.ShapeDtypeStruct((batch, hidden_size), jnp.float32),
        grid=(),
        in_specs=in_specs,
        out_specs=out_spec,
    )(vT, wT, b, hT)

    # Back to the PyTorch module's (hidden, batch) convention.
    return out_bT.T


def init_params(key, input_size, hidden_size, memory_size):
    """Deterministic synthetic params (module inits zeros; use small randoms
    so the nonlinearities are exercised)."""
    names_shapes = [
        ("W_ir", (hidden_size, input_size)),
        ("W_iz", (hidden_size, input_size)),
        ("W_in", (hidden_size, input_size)),
        ("b_ir", (hidden_size, 1)),
        ("b_iz", (hidden_size, 1)),
        ("b_in", (hidden_size, 1)),
        ("W_hr", (hidden_size, hidden_size)),
        ("W_hz", (hidden_size, hidden_size)),
        ("W_hn", (hidden_size, hidden_size)),
        ("b_hr", (hidden_size, 1)),
        ("b_hz", (hidden_size, 1)),
        ("b_hn", (hidden_size, 1)),
        ("W_mr", (hidden_size, memory_size)),
        ("W_mz", (hidden_size, memory_size)),
        ("W_mn", (hidden_size, memory_size)),
        ("b_mr", (hidden_size, 1)),
        ("b_mz", (hidden_size, 1)),
        ("b_mn", (hidden_size, 1)),
    ]
    keys = jax.random.split(key, len(names_shapes))
    return {
        name: (0.1 * jax.random.normal(k, shape, dtype=jnp.float32))
        for k, (name, shape) in zip(keys, names_shapes)
    }


def reference_gru(x, h, m, p):
    """Pure-JAX reference matching the PyTorch forward exactly."""
    r = jax.nn.sigmoid(p["W_ir"] @ x + p["b_ir"] + p["W_hr"] @ h + p["b_hr"]
                       + p["W_mr"] @ m + p["b_mr"])
    z = jax.nn.sigmoid(p["W_iz"] @ x + p["b_iz"] + p["W_hz"] @ h + p["b_hz"]
                       + p["W_mz"] @ m + p["b_mz"])
    n = jnp.tanh(p["W_in"] @ x + p["b_in"] + p["W_mn"] @ m + p["b_mn"]
                 + r * (p["W_hn"] @ h + p["b_hn"]))
    return (1.0 - z) * n + z * h


if __name__ == "__main__":
    input_size, hidden_size, memory_size, batch = 16, 32, 8, 4

    key = jax.random.PRNGKey(0)
    k_params, kx, kh, km = jax.random.split(key, 4)

    params = init_params(k_params, input_size, hidden_size, memory_size)
    x = jax.random.normal(kx, (input_size, batch), dtype=jnp.float32)
    h = jax.random.normal(kh, (hidden_size, batch), dtype=jnp.float32)
    m = jax.random.normal(km, (memory_size, batch), dtype=jnp.float32)

    ref = reference_gru(x, h, m, params)

    # f32 matmul path (safe on all generations, incl. v5e).
    packed_f32 = pack_params(params, matmul_dtype=jnp.float32)
    out = custom_gru_forward(x, h, m, packed_f32)
    out = jax.block_until_ready(out)
    assert out.shape == (hidden_size, batch)
    assert jnp.allclose(out, ref, atol=1e-4, rtol=1e-4), "f32 mismatch vs reference"

    # bf16 weight/operand path (v6e/v7x DMA/vreg savings); gate math stays f32.
    packed_bf16 = pack_params(params, matmul_dtype=jnp.bfloat16)
    out_bf16 = custom_gru_forward(x, h, m, packed_bf16)
    out_bf16 = jax.block_until_ready(out_bf16)
    assert jnp.allclose(out_bf16, ref, atol=5e-2, rtol=5e-2), "bf16 mismatch vs reference"

    print("KERNEL_OK")
</pallas_src>

<mosaic_0001>
module attributes {stable_mosaic.version = 11 : i64} {
  func.func @_gru_kernel(%arg0: memref<4x56xf32, #tpu.memory_space<vmem>>, %arg1: memref<56x128xf32, #tpu.memory_space<vmem>>, %arg2: memref<1x128xf32, #tpu.memory_space<vmem>>, %arg3: memref<4x32xf32, #tpu.memory_space<vmem>>, %arg4: memref<4x32xf32, #tpu.memory_space<vmem>>) attributes {dimension_semantics = [], scalar_prefetch = 0 : i64, scratch_operands = 0 : i64, tpu.core_type = #tpu.core_type<tc>} {
    %c0 = arith.constant 0 : index
    %c0_0 = arith.constant 0 : index
    %0 = vector.load %arg0[%c0, %c0_0] : memref<4x56xf32, #tpu.memory_space<vmem>>, vector<4x56xf32>
    %c0_1 = arith.constant 0 : index
    %c0_2 = arith.constant 0 : index
    %1 = vector.load %arg1[%c0_1, %c0_2] : memref<56x128xf32, #tpu.memory_space<vmem>>, vector<56x128xf32>
    %cst = arith.constant dense<0.000000e+00> : vector<4x128xf32>
    %2 = tpu.matmul %0, %1, %cst {dimension_numbers = #tpu.dot_dimension_numbers<[1], [0], [0], [1], [0, 0, 1, 1], [], []>} : vector<4x56xf32>, vector<56x128xf32>, vector<4x128xf32> -> vector<4x128xf32>
    %c0_3 = arith.constant 0 : index
    %c0_4 = arith.constant 0 : index
    %3 = vector.load %arg2[%c0_3, %c0_4] : memref<1x128xf32, #tpu.memory_space<vmem>>, vector<1x128xf32>
    %4 = vector.broadcast %3 : vector<1x128xf32> to vector<4x128xf32>
    %5 = arith.addf %2, %4 : vector<4x128xf32>
    %6 = vector.extract_strided_slice %5 {offsets = [0, 0], sizes = [4, 32], strides = [1, 1]} : vector<4x128xf32> to vector<4x32xf32>
    %7 = arith.negf %6 : vector<4x32xf32>
    %8 = math.exp %7 : vector<4x32xf32>
    %cst_5 = arith.constant 1.000000e+00 : f32
    %9 = vector.broadcast %cst_5 : f32 to vector<4x32xf32>
    %10 = arith.addf %9, %8 : vector<4x32xf32>
    %11 = arith.divf %9, %10 : vector<4x32xf32>
    %12 = vector.extract_strided_slice %5 {offsets = [0, 32], sizes = [4, 32], strides = [1, 1]} : vector<4x128xf32> to vector<4x32xf32>
    %13 = arith.negf %12 : vector<4x32xf32>
    %14 = math.exp %13 : vector<4x32xf32>
    %cst_6 = arith.constant 1.000000e+00 : f32
    %15 = vector.broadcast %cst_6 : f32 to vector<4x32xf32>
    %16 = arith.addf %15, %14 : vector<4x32xf32>
    %17 = arith.divf %15, %16 : vector<4x32xf32>
    %18 = vector.extract_strided_slice %5 {offsets = [0, 64], sizes = [4, 32], strides = [1, 1]} : vector<4x128xf32> to vector<4x32xf32>
    %19 = vector.extract_strided_slice %5 {offsets = [0, 96], sizes = [4, 32], strides = [1, 1]} : vector<4x128xf32> to vector<4x32xf32>
    %20 = arith.mulf %11, %19 : vector<4x32xf32>
    %21 = arith.addf %18, %20 : vector<4x32xf32>
    %22 = math.tanh %21 : vector<4x32xf32>
    %c0_7 = arith.constant 0 : index
    %c0_8 = arith.constant 0 : index
    %23 = vector.load %arg3[%c0_7, %c0_8] : memref<4x32xf32, #tpu.memory_space<vmem>>, vector<4x32xf32>
    %cst_9 = arith.constant 1.000000e+00 : f32
    %24 = vector.broadcast %cst_9 : f32 to vector<4x32xf32>
    %25 = arith.subf %24, %17 : vector<4x32xf32>
    %26 = arith.mulf %25, %22 : vector<4x32xf32>
    %27 = arith.mulf %17, %23 : vector<4x32xf32>
    %28 = arith.addf %26, %27 : vector<4x32xf32>
    %c0_10 = arith.constant 0 : index
    %c0_11 = arith.constant 0 : index
    %29 = vector.load %arg4[%c0_10, %c0_11] : memref<4x32xf32, #tpu.memory_space<vmem>>, vector<4x32xf32>
    tpu.vector_store %arg4[%c0_10, %c0_11], %28 {strides = array<i32>} : memref<4x32xf32, #tpu.memory_space<vmem>>, vector<4x32xf32>,
    return
  }
}

</mosaic_0001>

<bundles_post_ra>
// kernel: tpu_custom_call.1
= control target key start
LH: loop header
LB: loop body
LE: loop exit
PB: predicated region body
PF: predicated region fallthrough
CT: control target
= control target key end

     0   :  { %9 = vsyncpa [#allocation3], 0  ;;  %s396_s0 = inlined_call_operand.hbm [shape: f32[4,56], index: 0, kind: input, shape index: {}]   ;;  %s397_s1 = inlined_call_operand.hbm [shape: f32[56,128], index: 1, kind: input, shape index: {}]   ;;  %s398_s2 = inlined_call_operand.vmem [shape: f32[1,128], index: 2, kind: input, shape index: {}]   ;;  %s399_s3 = inlined_call_operand.vmem [shape: f32[4,32], index: 3, kind: input, shape index: {}]   ;;  %s400_s4 = inlined_call_operand.hbm [shape: f32[4,32], index: 4, kind: output, shape index: {}]  }
   0x1   :  { %10 = vsyncpa [#allocation6], 0 }
   0x2   :  { %11 = vsyncpa [#allocation4], 0  ;;  %s311_s15 = smov [#allocation2]   ;;  %s312_s17 = smov [#allocation5]  }
   0x3   :  { %s18_s16 = sshll.u32 %s311_s15, 4  ;;  %s27_s18 = sshll.u32 %s312_s17, 4  ;;  %s19_s16 = int_to_ptr.vmem [resolvable:$true] %s18_s16  ;;  %s347_s18 = int_to_ptr.vmem [resolvable:$true] %s27_s18 }
   0x4   :  { %s239_s21 = scalar_lea.hbm %s396_s0, 64 }
   0x5   :  { %p240_p0 = scmp.ne.s32.totalorder %s396_s0, %s239_s21  ;;  %p243_p1 = scmp.lt.u32.totalorder %s239_s21, %s396_s0 }
   0x7   :  { %p245_p2 = pnand %p243_p1, %p240_p0 }
   0x9   :  { %248 = shalt.err (!%p245_p2)
}
   0xa   :  { %s249_s26 = scalar_lea.vmem %s19_s16, 64  ;;  %p254_p4 = scmp.lt.s32.totalorder %s19_s16, %s19_s16 }
   0xb   :  { %p250_p3 = scmp.ne.s32.totalorder %s19_s16, %s249_s26  ;;  %p255_p5 = scmp.lt.s32.totalorder %s249_s26, %s249_s26 }
   0xd   :  { %p256_p6 = por %p255_p5, %p254_p4 }
   0xf   :  { %p257_p7 = pnand %p256_p6, %p250_p3 }
  0x11   :  { %260 = shalt.err (!%p257_p7)
}
  0x12   :  { %21 = dma.hbm_to_vmem [thread:$0]  %s396_s0, 64, %s19_s16, [#allocation3]  }
  0x13   :  { %s261_s5 = scalar_lea.hbm %s397_s1, 896 }
  0x14   :  { %p262_p8 = scmp.ne.s32.totalorder %s397_s1, %s261_s5  ;;  %p265_p9 = scmp.lt.u32.totalorder %s261_s5, %s397_s1 }
  0x16   :  { %p267_p10 = pnand %p265_p9, %p262_p8 }
  0x18   :  { %270 = shalt.err (!%p267_p10)
}
  0x19   :  { %s271_s10 = scalar_lea.vmem %s347_s18, 896  ;;  %p276_p12 = scmp.lt.s32.totalorder %s347_s18, %s347_s18 }
  0x1a   :  { %p272_p11 = scmp.ne.s32.totalorder %s347_s18, %s271_s10  ;;  %p277_p13 = scmp.lt.s32.totalorder %s271_s10, %s271_s10 }
  0x1c   :  { %p278_p0 = por %p277_p13, %p276_p12 }
  0x1e   :  { %p279_p1 = pnand %p278_p0, %p272_p11 }
  0x20   :  { %282 = shalt.err (!%p279_p1)
}
  0x21   :  { %s313_s0 = smov 128   ;;  %s314_s11 = smov 8  }
  0x22   :  { %33 = dma.hbm_to_vmem [thread:$0]  %s397_s1, 896, %s347_s18, [#allocation6], %s313_s0, %s313_s0, %s314_s11  }
  0x23   :  { %305 = dma.done.wait [#allocation3], 64  }
  0x24   :  { %306 = vsyncadd [#allocation3], 4294967232 }
  0x25   :  { %307 = dma.done.wait [#allocation6], 896  }
  0x26   :  { %308 = vsyncadd [#allocation6], 4294966400  ;;  %v315_v0 = vmov 0.0|0.0   ;;  %vm316_vm0 = vmmov 0   ;;  %v317_v1 = vmov 0.0   ;;  %v45_v2 = vld [vmem:[#allocation5] sm:$0xff] }
  0x27   :  { %213 = vmatprep.subr.bf16.mxu0 %v315_v0  ;;  %210 = vmatprep.mubr.msk.f32.mxu0 %vm316_vm0, %v317_v1  ;;  %v46_v3 = vld [vmem:[#allocation5 + $0x8] sm:$0xff]  ;;  %v47_v4 = vld [vmem:[#allocation5 + $0x10] sm:$0xff]  ;;  %v48_v6 = vld [vmem:[#allocation5 + $0x18] sm:$0xff]  ;;  %vm59_vm1 = vcmask 457728   ;;  %s318_s15 = smov 32   ;;  %s319_s16 = smov 64  }
  0x28   :  { %v214_v5 = vpack.c.bf16 %v46_v3, %v45_v2  ;;  %v217_v7 = vpack.c.bf16 %v48_v6, %v47_v4  ;;  %v49_v8 = vld [vmem:[#allocation5 + $0x20] sm:$0xff]  ;;  %v50_v9 = vld [vmem:[#allocation5 + $0x28] sm:$0xff]  ;;  %v51_v11 = vld [vmem:[#allocation5 + $0x30] sm:$0xff]  ;;  %s321_s19 = smov [#allocation7]   ;;  %vm167_vm2 = vcmask 257024  }
  0x29   :  { %v220_v10 = vpack.c.bf16 %v50_v9, %v49_v8  ;;  %v44_v12 = vld [vmem:[#allocation2] sm:$0xf]  ;;  %s175_s20 = sshll.u32 %s321_s19, 4  ;;  %s176_s20 = int_to_ptr.vmem [resolvable:$true] %s175_s20 }
  0x2a   :  { %215 = vmatpush3.bf16.msra.mxu0 %v214_v5  ;;  %v185_v13 = vld [vmem:[%s398_s2] ss:$0 sm:$0xff]  ;;  %s320_s2 = smov 96   ;;  %s283_s21 = scalar_lea.vmem %s176_s20, 64 }
  0x2b   :  { %216 = vmatprep.subr.bf16.mxu0 %v315_v0  ;;  %v150_v26 = vld [vmem:[%s399_s3] sm:$0xf]  ;;  %p284_p2 = scmp.ne.s32.totalorder %s176_s20, %s283_s21  ;;  %p288_p3 = scmp.lt.s32.totalorder %s176_s20, %s176_s20 }
  0x2c   :  { %p289_p4 = scmp.lt.s32.totalorder %s283_s21, %s283_s21 }
  0x2e   :  { %218 = vmatpush3.bf16.msra.mxu0 %v217_v7  ;;  %p290_p5 = por %p289_p4, %p288_p3 }
  0x2f   :  { %219 = vmatprep.subr.bf16.mxu0 %v315_v0 }
  0x30   :  { %p291_p6 = pnand %p290_p5, %p284_p2 }
  0x32   :  { %221 = vmatpush3.bf16.msra.mxu0 %v220_v10 }
  0x33   :  { %208 = vmatprep.subr.mxu0 %v317_v1 }
  0x36   :  { %209 = vmatpush3.msra.mxu0 %v51_v11 }
  0x37   :  { %211 = vmatmul.mubr.msk.f32.vlgmr.msra.gmra.mrb[0].mxu0 %vm59_vm1, %v44_v12 }
 0x10a   :  { %v129_v14 = vpop.f32.mrb[0].mxu0 }
 0x10b   :  { %v130_v15 = vadd.f32 %v185_v13, %v129_v14  ;;  %v212_v16 = vpop.f32.mrb[1].mxu0 }
 0x10d   :  { %140 = vrot.lane.b32.xlu0 %v130_v15, %s318_s15  ;;  %v187_v17 = vmul.f32 -1.442695, %v130_v15 }
 0x10f   :  { %233 = vpow2.f32 %v187_v17 }
 0x119   :  { %v234_v18 = vpop.eup %233 }
 0x11a   :  { %v136_v19 = vadd.f32 1.0, %v234_v18 }
 0x11c   :  { %235 = vrcp.f32 %v136_v19 }
 0x126   :  { %v236_v20 = vpop.eup %235 }
 0x127   :  { %v151_v28 = vsub.f32 1.0, %v236_v20 }
 0x17f   :  { %v141_v21 = vpop.permute.xlu0 %140 }
 0x180   :  { %v143_v22 = vmul.f32 %v236_v20, %v141_v21 }
 0x182   :  { %145 = vrot.lane.b32.xlu0 %v143_v22, %s319_s16 }
 0x1f4   :  { %v146_v23 = vpop.permute.xlu0 %145 }
 0x1f5   :  { %v148_v24 = vadd.f32 %v146_v23, %v130_v15 }
 0x1f7   :  { %237 = vtanh.f32 %v148_v24 }
 0x201   :  { %v238_v25 = vpop.eup %237 }
 0x202   :  { %153 = vrot.lane.b32.xlu1 %v238_v25, %s320_s2 }
 0x206   :  { %158 = vrot.lane.b32.xlu1 %v150_v26, %s318_s15 }
 0x274   :  { %v154_v27 = vpop.permute.xlu1 %153 }
 0x275   :  { %v156_v30 = vmul.f32 %v154_v27, %v151_v28 }
 0x278   :  { %v159_v29 = vpop.permute.xlu1 %158 }
 0x279   :  { %v161_v31 = vmul.f32 %v236_v20, %v159_v29 }
 0x27b   :  { %v162_v32 = vadd.f32 %v161_v31, %v156_v30 }
 0x27d   :  { %164 = vrot.lane.b32.xlu0 %v162_v32, %s320_s2 }
 0x2ef   :  { %v165_v33 = vpop.permute.xlu0 %164 }
 0x2f0   :  { %168 = vst.msk [vmem:[#allocation7] sm:$0xf] %vm167_vm2, %v165_v33 }
 0x2f1   :  { %294 = shalt.err (!%p291_p6)
}
 0x2f2   :  { %s295_s23 = scalar_lea.hbm %s400_s4, 64 }
 0x2f3   :  { %p296_p7 = scmp.ne.s32.totalorder %s400_s4, %s295_s23  ;;  %p299_p8 = scmp.lt.u32.totalorder %s295_s23, %s400_s4 }
 0x2f5   :  { %p301_p9 = pnand %p299_p8, %p296_p7 }
 0x2f7   :  { %304 = shalt.err (!%p301_p9)
}
 0x2f8   :  { %178 = dma.vmem_to_hbm [thread:$0]  %s176_s20, 64, %s400_s4, [#allocation4]  }
 0x2f9   :  { %309 = dma.done.wait [#allocation4], 64  }
 0x2fa   :  { %310 = vsyncadd [#allocation4], 4294967232 }
 0x2fb   :  { %182 = vsyncpa [#allocation3], 1 }
 0x2fc   :  { %183 = vsyncpa [#allocation6], 1 }
 0x2fd   :  { %184 = vsyncpa [#allocation4], 1 }

</bundles_post_ra>
